<compile_context>
chip_gen: v6e
topology: v6e:2x2x1
jax: 0.10.0
libtpu: 0.0.40
codegen_flags: <defaults>
</compile_context>

<pallas_src>
import jax
import jax.numpy as jnp
from jax import lax
from jax.experimental import pallas as pl
from jax.experimental.pallas import tpu as pltpu


def _round_up(x, m):
    return ((x + m - 1) // m) * m


def _choose_block_rows(B, F, itemsize):
    """Pick the batch tile (rows per grid step) from an ~4 MiB VMEM-byte budget.

    F lane-pads to a multiple of 128 in VMEM, so the budget uses the padded
    width. Returns (Bt, num_tiles).
    """
    f_pad = _round_up(max(F, 1), 128)
    target_buf_bytes = 4 * 1024 * 1024          # per x buffer
    bt = target_buf_bytes // (f_pad * itemsize)
    bt = max(128, (bt // 128) * 128)            # lane-dense output rows
    bt = min(bt, 16384)
    if B <= bt:
        return B, 1                             # single full-extent tile
    n = pl.cdiv(B, bt)
    bt = _round_up(pl.cdiv(B, n), 128)          # rebalance tiles (helps v7x 2-TC split)
    return bt, pl.cdiv(B, bt)


def _linear_kernel(b_ref, x_ref, w_ref, o_ref):
    # b_ref: (1, 1) f32 bias scalar in SMEM
    # x_ref: (Bt, F) input tile in VMEM, native dtype (pipelined over the grid)
    # w_ref: (1, F)  weight in VMEM (constant index_map -> stays resident)
    # o_ref: (1, Bt) lane-dense output row (dtype == input dtype)
    x = x_ref[...]
    w = w_ref[...]
    if w.dtype != x.dtype:
        w = w.astype(x.dtype)  # tiny (1, F); keeps the (Bt, F) tile native-width
    # Contract axis 1 of BOTH operands: result is (1, Bt) with batch already on
    # the lane axis -> no transpose/relayout of the x tile, f32 MXU accumulation.
    y = lax.dot_general(
        w, x,
        dimension_numbers=(((1,), (1,)), ((), ())),
        preferred_element_type=jnp.float32,
    )
    o_ref[...] = (y + b_ref[0, 0]).astype(o_ref.dtype)


def regression_model_forward(x, weight, bias, *, force_pallas=False, block_rows=None):
    """Pallas equivalent of RegressionModel.forward: y = x @ W^T + b (no tanh)."""
    B, F = x.shape
    assert weight.shape == (1, F)
    out_dtype = x.dtype
    itemsize = jnp.dtype(x.dtype).itemsize

    # Tiny problems: kernel launch / pipeline setup dominates -> plain XLA.
    if not force_pallas and B * _round_up(F, 128) * itemsize < (1 << 20):
        y = jnp.dot(x, weight.T, preferred_element_type=jnp.float32)
        return (y + bias.astype(jnp.float32)).astype(out_dtype)

    if block_rows is None:
        Bt, num_tiles = _choose_block_rows(B, F, itemsize)
    else:
        Bt = min(int(block_rows), B)
        if Bt < B:
            Bt = _round_up(Bt, 128)   # keep output lane blocks 128-dense
        num_tiles = pl.cdiv(B, Bt)

    b2d = jnp.asarray(bias, jnp.float32).reshape(1, 1)

    cost = pl.CostEstimate(
        flops=2 * B * F,
        transcendentals=0,
        bytes_accessed=(B * F * itemsize
                        + F * jnp.dtype(weight.dtype).itemsize
                        + B * jnp.dtype(out_dtype).itemsize),
    )

    # Triple-buffer the streamed input when there are enough steps to benefit.
    x_spec_kwargs = {}
    if num_tiles > 2 and hasattr(pl, "Buffered"):
        x_spec_kwargs["pipeline_mode"] = pl.Buffered(3)

    out = pl.pallas_call(
        _linear_kernel,
        out_shape=jax.ShapeDtypeStruct((1, B), out_dtype),
        grid=(num_tiles,),
        in_specs=[
            pl.BlockSpec(memory_space=pltpu.MemorySpace.SMEM),            # bias scalar
            pl.BlockSpec((Bt, F), lambda i: (i, 0), **x_spec_kwargs),     # streamed x
            pl.BlockSpec((1, F), lambda i: (0, 0)),                       # resident weight
        ],
        out_specs=pl.BlockSpec((1, Bt), lambda i: (0, i)),                # lane-dense out
        compiler_params=pltpu.CompilerParams(
            dimension_semantics=("parallel",),
            vmem_limit_bytes=48 * 1024 * 1024,   # safe on v7x (64 MiB physical)
        ),
        cost_estimate=cost,
    )(b2d, x, weight)

    # Layout plumbing only: (1, B) lane-dense row -> torch-style (B, 1).
    return out.reshape(B, 1)


if __name__ == "__main__":
    n_feats = 32

    key = jax.random.PRNGKey(0)
    kx, kw, kb, kx2 = jax.random.split(key, 4)

    # Deterministic params (mimicking torch Linear's uniform(-1/sqrt(F), 1/sqrt(F)))
    bound = 1.0 / (n_feats ** 0.5)
    weight = jax.random.uniform(kw, (1, n_feats), jnp.float32, -bound, bound)
    bias = jax.random.uniform(kb, (1,), jnp.float32, -bound, bound)

    # 1) Small batch forced through the Pallas path (single full-extent tile).
    batch = 8
    x = jax.random.normal(kx, (batch, n_feats), jnp.float32)
    y = regression_model_forward(x, weight, bias, force_pallas=True)
    jax.block_until_ready(y)
    y_ref = x @ weight.T + bias
    assert y.shape == (batch, 1)
    assert jnp.allclose(y, y_ref, atol=1e-5, rtol=1e-5)

    # 2) Multi-tile grid + ragged last block (1030 rows, 512-row tiles -> 3 steps),
    #    exercising the no-pad path.
    batch2 = 1030
    x2 = jax.random.normal(kx2, (batch2, n_feats), jnp.float32)
    y2 = regression_model_forward(x2, weight, bias, force_pallas=True, block_rows=512)
    jax.block_until_ready(y2)
    y2_ref = x2 @ weight.T + bias
    assert y2.shape == (batch2, 1)
    assert jnp.allclose(y2, y2_ref, atol=1e-5, rtol=1e-5)

    # 3) Default heuristic: tiny problem falls back to plain XLA (same numerics).
    y3 = regression_model_forward(x, weight, bias)
    jax.block_until_ready(y3)
    assert jnp.allclose(y3, y_ref, atol=1e-5, rtol=1e-5)

    print("KERNEL_OK")
</pallas_src>

<mosaic_0001>
module attributes {stable_mosaic.version = 11 : i64} {
  func.func @_linear_kernel(%arg0: i32, %arg1: memref<1x1xf32, #tpu.memory_space<smem>>, %arg2: memref<8x32xf32, #tpu.memory_space<vmem>>, %arg3: memref<1x32xf32, #tpu.memory_space<vmem>>, %arg4: memref<1x8xf32, #tpu.memory_space<vmem>>) attributes {dimension_semantics = [#tpu.dimension_semantics<parallel>], iteration_bounds = array<i64: 1>, scalar_prefetch = 0 : i64, scratch_operands = 0 : i64, tpu.core_type = #tpu.core_type<tc>, window_params = [{transform_indices = @transform_0, window_bounds = array<i64: 1, 1>}, {transform_indices = @transform_1, window_bounds = array<i64: 8, 32>}, {pipeline_mode = #tpu.pipeline_mode<synchronous>, transform_indices = @transform_2, window_bounds = array<i64: 1, 32>}, {transform_indices = @transform_3, window_bounds = array<i64: 1, 8>}]} {
    %c0 = arith.constant 0 : index
    %c0_0 = arith.constant 0 : index
    %0 = vector.load %arg2[%c0, %c0_0] : memref<8x32xf32, #tpu.memory_space<vmem>>, vector<8x32xf32>
    %c0_1 = arith.constant 0 : index
    %c0_2 = arith.constant 0 : index
    %1 = vector.load %arg3[%c0_1, %c0_2] : memref<1x32xf32, #tpu.memory_space<vmem>>, vector<1x32xf32>
    %cst = arith.constant dense<0.000000e+00> : vector<1x8xf32>
    %2 = tpu.matmul %1, %0, %cst {dimension_numbers = #tpu.dot_dimension_numbers<[1], [1], [0], [0], [0, 0, 1, 0], [], []>} : vector<1x32xf32>, vector<8x32xf32>, vector<1x8xf32> -> vector<1x8xf32>
    %c0_3 = arith.constant 0 : index
    %c0_4 = arith.constant 0 : index
    %3 = memref.load %arg1[%c0_3, %c0_4] : memref<1x1xf32, #tpu.memory_space<smem>>
    %4 = vector.broadcast %3 : f32 to vector<1x8xf32>
    %5 = arith.addf %2, %4 : vector<1x8xf32>
    %c0_5 = arith.constant 0 : index
    %c0_6 = arith.constant 0 : index
    %6 = vector.load %arg4[%c0_5, %c0_6] : memref<1x8xf32, #tpu.memory_space<vmem>>, vector<1x8xf32>
    tpu.vector_store %arg4[%c0_5, %c0_6], %5 {strides = array<i32>} : memref<1x8xf32, #tpu.memory_space<vmem>>, vector<1x8xf32>,
    return
  }
  func.func @transform_0(%arg0: i32) -> (i32, i32) {
    %c0_i32 = arith.constant 0 : i32
    %c0_i32_0 = arith.constant 0 : i32
    %c0_i32_1 = arith.constant 0 : i32
    return %c0_i32, %c0_i32_0 : i32, i32
  }
  func.func @transform_1(%arg0: i32) -> (i32, i32) {
    %c0_i32 = arith.constant 0 : i32
    %c0_i32_0 = arith.constant 0 : i32
    return %arg0, %c0_i32 : i32, i32
  }
  func.func @transform_2(%arg0: i32) -> (i32, i32) {
    %c0_i32 = arith.constant 0 : i32
    %c0_i32_0 = arith.constant 0 : i32
    %c0_i32_1 = arith.constant 0 : i32
    return %c0_i32, %c0_i32_0 : i32, i32
  }
  func.func @transform_3(%arg0: i32) -> (i32, i32) {
    %c0_i32 = arith.constant 0 : i32
    %c0_i32_0 = arith.constant 0 : i32
    return %c0_i32, %arg0 : i32, i32
  }
}

</mosaic_0001>

<bundles_post_ra>
// kernel: tpu_custom_call.1
= control target key start
LH: loop header
LB: loop body
LE: loop exit
PB: predicated region body
PF: predicated region fallthrough
CT: control target
= control target key end

     0   :  { %9 = vsyncpa [#allocation4], 0  ;;  %s219_s0 = inlined_call_operand.<no memory space> [shape: f32[1,1], index: 0, kind: input, shape index: {}]   ;;  %s220_s1 = inlined_call_operand.hbm [shape: f32[8,32], index: 1, kind: input, shape index: {}]   ;;  %s221_s2 = inlined_call_operand.vmem [shape: f32[1,32], index: 2, kind: input, shape index: {}]   ;;  %s222_s3 = inlined_call_operand.hbm [shape: f32[1,8], index: 3, kind: output, shape index: {}]  }
   0x1   :  { %10 = vsyncpa [#allocation5], 0  ;;  %s183_s12 = smov [#allocation3]  }
   0x2   :  { %s19_s13 = sshll.u32 %s183_s12, 4  ;;  %s20_s13 = int_to_ptr.vmem [resolvable:$true] %s19_s13 }
   0x3   :  { %s147_s14 = scalar_lea.vmem %s20_s13, 128  ;;  %p152_p1 = scmp.lt.s32.totalorder %s20_s13, %s20_s13 }
   0x4   :  { %p148_p0 = scmp.ne.s32.totalorder %s20_s13, %s147_s14  ;;  %p153_p2 = scmp.lt.s32.totalorder %s147_s14, %s147_s14 }
   0x6   :  { %p154_p3 = por %p153_p2, %p152_p1 }
   0x8   :  { %p155_p4 = pnand %p154_p3, %p148_p0 }
   0xa   :  { %158 = shalt.err (!%p155_p4)
}
   0xb   :  { %22 = dma.hbm_to_vmem [thread:$0]  %s220_s1, 128, %s20_s13, [#allocation4]  }
   0xc   :  { %179 = dma.done.wait [#allocation4], 128  }
   0xd   :  { %180 = vsyncadd [#allocation4], 4294967168  ;;  %v184_v0 = vmov 0.0   ;;  %vm185_vm0 = vmmov 0   ;;  %vm32_vm1 = vcmask 261120   ;;  %v28_v1 = vld [vmem:[#allocation3] sm:$0xff]  ;;  %v31_v3 = vstv %s219_s0 }
   0xe   :  { %130 = vmatprep.subr.mxu0 %v184_v0  ;;  %132 = vmatprep.mubr.msk.f32.mxu0 %vm185_vm0, %v184_v0  ;;  %v29_v2 = vld [vmem:[%s221_s2] sm:$0x1]  ;;  %s186_s21 = smov [#allocation6]   ;;  %vm109_vm2 = vcmask 57344  }
   0xf   :  { %131 = vmatpush3.xpose.msk.msra.mxu0 %vm32_vm1, %v28_v1  ;;  %s117_s1 = sshll.u32 %s186_s21, 4  ;;  %s118_s1 = int_to_ptr.vmem [resolvable:$true] %s117_s1 }
  0x10   :  { %s159_s22 = scalar_lea.vmem %s118_s1, 16  ;;  %s163_s23 = scalar_lea.vmem %s118_s1, 32 }
  0x11   :  { %p160_p5 = scmp.ne.s32.totalorder %s118_s1, %s159_s22  ;;  %p164_p6 = scmp.lt.s32.totalorder %s118_s1, %s118_s1 }
  0x12   :  { %133 = vmatmul.mubr.msk.f32.vlgmr.msra.gmra.mxu0 %vm32_vm1, %v29_v2  ;;  %p165_p7 = scmp.lt.s32.totalorder %s163_s23, %s159_s22 }
  0x14   :  { %p166_p8 = por %p165_p7, %p164_p6 }
  0x16   :  { %p167_p9 = pnand %p166_p8, %p160_p5 }
  0xd2   :  { %v105_v4 = vpop.f32.mrf.mxu0 }
  0xd3   :  { %v106_v5 = vadd.f32 %v105_v4, %v31_v3 }
  0xd4   :  { %v134_v6 = vpop.f32.mrf.mxu0 }
  0xd5   :  { %110 = vst.msk [vmem:[#allocation6] sm:$0x1] %vm109_vm2, %v106_v5 }
  0xd6   :  { %170 = shalt.err (!%p167_p9)
}
  0xd7   :  { %120 = dma.vmem_to_hbm [thread:$0]  %s118_s1, 16, %s222_s3, [#allocation5]  }
  0xd8   :  { %181 = dma.done.wait [#allocation5], 16  }
  0xd9   :  { %182 = vsyncadd [#allocation5], 4294967280 }
  0xda   :  { %124 = vsyncpa [#allocation4], 1 }
  0xdb   :  { %125 = vsyncpa [#allocation5], 1 }

</bundles_post_ra>
